<compile_context>
chip_gen: v5e
topology: v5e:2x2
jax: 0.10.0
libtpu: 0.0.40
codegen_flags: <defaults>
</compile_context>

<pallas_src>
import functools

import jax
import jax.numpy as jnp
import numpy as np
from jax.experimental import pallas as pl
from jax.experimental.pallas import tpu as pltpu

_NEG = -1e30


def _round_up(x, m):
    return (x + m - 1) // m * m


@functools.lru_cache(maxsize=1)
def _vmem_capacity_bytes():
    try:
        info = pltpu.get_tpu_info()
        cap = getattr(info, "vmem_capacity_bytes", None)
        if cap:
            return int(cap)
    except Exception:
        pass
    return 0  # unknown


def _vmem_limit_bytes():
    cap = _vmem_capacity_bytes()
    if cap > 64 * 1024 * 1024:
        return 96 * 1024 * 1024      # v5e / v6e: 128 MiB physical
    return 40 * 1024 * 1024          # v7x (64 MiB physical) or unknown: be safe


def _pick_tile(n):
    cap = _vmem_capacity_bytes()
    tmax = 512 if cap > 64 * 1024 * 1024 else 256
    if n <= tmax:
        return _round_up(max(n, 8), 8)   # single tile == full array dims
    return tmax


# ----------------------------------------------------------------------------
# Kernel 1: fused projection  h = x @ W,  el/er head scores  (row-tiled)
# ----------------------------------------------------------------------------
def _proj_kernel(x_ref, w_ref, alT_ref, ar_ref, h_ref, elT_ref, er_ref):
    """
    x_ref   : (TM, Fin)  bf16 node-feature row tile
    w_ref   : (Fin, HD)  bf16 projection weight (all heads fused, resident)
    alT_ref : (H, HD)    bf16 block "attn_l" matrix (resident)
    ar_ref  : (HD, H)    bf16 block "attn_r" matrix (resident)
    h_ref   : (TM, HD)   bf16 projected features (row tile)
    elT_ref : (H, TM)    f32 source scores, head-major (column tile)
    er_ref  : (TM, H)    f32 destination scores (row tile)
    """
    h_f32 = jnp.dot(x_ref[...], w_ref[...], preferred_element_type=jnp.float32)
    h_bf = h_f32.astype(jnp.bfloat16)
    h_ref[...] = h_bf
    # el^T[h, n] = sum_k alT[h, k] * h[n, k]  ("NT" matmul, no transpose op)
    elT_ref[...] = jnp.einsum("hk,nk->hn", alT_ref[...], h_bf,
                              preferred_element_type=jnp.float32)
    er_ref[...] = jnp.dot(h_bf, ar_ref[...], preferred_element_type=jnp.float32)


# ----------------------------------------------------------------------------
# Kernel 2: flash-style masked edge-softmax + aggregation + bias + ReLU
# ----------------------------------------------------------------------------
def _attn_kernel(h_ref, elT_ref, er_ref, adjm_ref, indeg_ref, bias_ref,
                 out_ref, m_sc, l_sc, acc_sc, *, num_heads, head_dim):
    """
    Grid: (dst_tile i [parallel], src_tile k [arbitrary]).
    h_ref     : (TK, HD)  bf16 projected source features (src tile)
    elT_ref   : (H, TK)   f32 source scores (src tile)
    er_ref    : (TM, H)   f32 destination scores (dst tile)
    adjm_ref  : (TM, TK)  int8 0/1 mask: 1 iff edge src->dst
    indeg_ref : (TM, 1)   f32 1.0 if dst has >=1 incoming edge else 0.0
    bias_ref  : (1, HD)   f32 output bias (all heads)
    out_ref   : (TM, HD)  bf16 output slab (written at last src tile)
    m_sc/l_sc : (TM, H)   f32 running max / denominator scratch
    acc_sc    : (TM, HD)  f32 running accumulator scratch
    """
    k = pl.program_id(1)
    nk = pl.num_programs(1)

    @pl.when(k == 0)
    def _():
        m_sc[...] = jnp.full_like(m_sc, _NEG)
        l_sc[...] = jnp.zeros_like(l_sc)
        acc_sc[...] = jnp.zeros_like(acc_sc)

    mask = adjm_ref[...] != 0                                  # (TM, TK) bool

    for hh in range(num_heads):
        c0, c1 = hh * head_dim, (hh + 1) * head_dim
        el_row = elT_ref[hh:hh + 1, :]                         # (1, TK) f32
        er_col = er_ref[:, hh:hh + 1]                          # (TM, 1) f32
        s = er_col + el_row                                    # (TM, TK)
        s = jnp.maximum(s, 0.2 * s)                            # LeakyReLU(0.2)
        s = jnp.where(mask, s, _NEG)                           # edge mask
        m_prev = m_sc[:, hh:hh + 1]                            # (TM, 1)
        m_new = jnp.maximum(m_prev, jnp.max(s, axis=-1, keepdims=True))
        a = jnp.exp(m_prev - m_new)                            # correction
        p = jnp.exp(s - m_new)                                 # un-normalized
        l_sc[:, hh:hh + 1] = a * l_sc[:, hh:hh + 1] + jnp.sum(
            p, axis=-1, keepdims=True)
        acc_sc[:, c0:c1] = a * acc_sc[:, c0:c1] + jnp.dot(
            p.astype(jnp.bfloat16), h_ref[:, c0:c1],
            preferred_element_type=jnp.float32)
        m_sc[:, hh:hh + 1] = m_new

    @pl.when(k == nk - 1)
    def _():
        # normalize after the matmul; zero-in-degree rows via indeg flag
        scale = pl.reciprocal(l_sc[...], approx=True) * indeg_ref[...]  # (TM,H)
        for hh in range(num_heads):
            c0, c1 = hh * head_dim, (hh + 1) * head_dim
            slab = acc_sc[:, c0:c1] * scale[:, hh:hh + 1] + bias_ref[:, c0:c1]
            out_ref[:, c0:c1] = jnp.maximum(slab, 0.0).astype(out_ref.dtype)


# ----------------------------------------------------------------------------
# One GATConv layer (+ReLU) on padded inputs; returns padded (Np, H*D) bf16
# ----------------------------------------------------------------------------
def gat_conv_relu_padded(x_bf, adj_mask, indeg, w, attn_l, attn_r, bias,
                         num_heads, out_feats, tile):
    Np, fin = x_bf.shape
    H, D = num_heads, out_feats
    HD = H * D
    vmem = _vmem_limit_bytes()

    eye = jnp.eye(H, dtype=jnp.float32)
    al = attn_l.reshape(H, D)
    ar = attn_r.reshape(H, D)
    # block matrices so el/er are plain matmuls: elT = alT_mat @ h^T, er = h @ ar_mat
    alT_mat = (eye[:, :, None] * al[None, :, :]).reshape(H, HD).astype(jnp.bfloat16)
    ar_mat = (ar[:, :, None] * eye[:, None, :]).reshape(HD, H).astype(jnp.bfloat16)
    w_bf = w.astype(jnp.bfloat16)
    bias_row = bias.reshape(1, HD).astype(jnp.float32)

    n_tiles = Np // tile

    h_bf, elT, er = pl.pallas_call(
        _proj_kernel,
        out_shape=(jax.ShapeDtypeStruct((Np, HD), jnp.bfloat16),
                   jax.ShapeDtypeStruct((H, Np), jnp.float32),
                   jax.ShapeDtypeStruct((Np, H), jnp.float32)),
        grid_spec=pltpu.PrefetchScalarGridSpec(
            num_scalar_prefetch=0,
            grid=(n_tiles,),
            in_specs=[
                pl.BlockSpec((tile, fin), lambda i: (i, 0)),   # x row tile
                pl.BlockSpec((fin, HD), lambda i: (0, 0)),     # W (resident)
                pl.BlockSpec((H, HD), lambda i: (0, 0)),       # attn_l (resident)
                pl.BlockSpec((HD, H), lambda i: (0, 0)),       # attn_r (resident)
            ],
            out_specs=[
                pl.BlockSpec((tile, HD), lambda i: (i, 0)),
                pl.BlockSpec((H, tile), lambda i: (0, i)),
                pl.BlockSpec((tile, H), lambda i: (i, 0)),
            ],
        ),
        compiler_params=pltpu.CompilerParams(
            dimension_semantics=("parallel",),
            vmem_limit_bytes=vmem),
    )(x_bf, w_bf, alT_mat, ar_mat)

    out = pl.pallas_call(
        functools.partial(_attn_kernel, num_heads=H, head_dim=D),
        out_shape=jax.ShapeDtypeStruct((Np, HD), jnp.bfloat16),
        grid_spec=pltpu.PrefetchScalarGridSpec(
            num_scalar_prefetch=0,
            grid=(n_tiles, n_tiles),
            in_specs=[
                pl.BlockSpec((tile, HD), lambda i, k: (k, 0)),    # h src tile
                pl.BlockSpec((H, tile), lambda i, k: (0, k)),     # elT src tile
                pl.BlockSpec((tile, H), lambda i, k: (i, 0)),     # er dst tile
                pl.BlockSpec((tile, tile), lambda i, k: (i, k)),  # int8 mask tile
                pl.BlockSpec((tile, 1), lambda i, k: (i, 0)),     # indeg dst tile
                pl.BlockSpec((1, HD), lambda i, k: (0, 0)),       # bias
            ],
            out_specs=pl.BlockSpec((tile, HD), lambda i, k: (i, 0)),
            scratch_shapes=[pltpu.VMEM((tile, H), jnp.float32),   # running max
                            pltpu.VMEM((tile, H), jnp.float32),   # denominator
                            pltpu.VMEM((tile, HD), jnp.float32)], # accumulator
        ),
        compiler_params=pltpu.CompilerParams(
            dimension_semantics=("parallel", "arbitrary"),
            vmem_limit_bytes=vmem),
    )(h_bf, elT, er, adj_mask, indeg, bias_row)
    return out


# ----------------------------------------------------------------------------
# multiLayerGAT / HeterGAT forward glue
# ----------------------------------------------------------------------------
def multi_layer_gat(adj, feature, layer_params, num_heads):
    N = feature.shape[0]
    tile = _pick_tile(N)
    Np = _round_up(N, tile)

    x = jnp.zeros((Np, feature.shape[1]), jnp.bfloat16).at[:N, :].set(
        feature.astype(jnp.bfloat16))

    mask = adj.T > 0                                       # (dst, src)
    adj_mask = jnp.zeros((Np, Np), jnp.int8).at[:N, :N].set(mask.astype(jnp.int8))
    indeg = jnp.zeros((Np, 1), jnp.float32).at[:N, :].set(
        jnp.any(mask, axis=1, keepdims=True).astype(jnp.float32))

    h = x
    out_feats = None
    for (w, al, ar, b, out_feats) in layer_params:
        h = gat_conv_relu_padded(h, adj_mask, indeg, w, al, ar, b,
                                 num_heads, out_feats, tile)
    return h[:N].astype(jnp.float32).reshape(N, num_heads, out_feats).mean(axis=1)


def heter_gat(sub_graphs, features, all_params, num_heads, aggregation="sum"):
    f_list = [multi_layer_gat(adj, features, all_params[i], num_heads)
              for i, adj in enumerate(sub_graphs)]
    if aggregation == "sum":
        return jnp.sum(jnp.stack(f_list, axis=0), axis=0)
    raise ValueError("unsupported aggregation")


# ----------------------------------------------------------------------------
# Deterministic parameter init (shapes as in DGL GATConv)
# ----------------------------------------------------------------------------
def init_params(key, layer_dim, num_heads, num_edge_types):
    all_params = []
    for _ in range(num_edge_types):
        layers = []
        in_dim = layer_dim[0]
        for li in range(len(layer_dim) - 1):
            out_feats = layer_dim[li + 1]
            key, k1, k2, k3, k4 = jax.random.split(key, 5)
            w = jax.random.normal(k1, (in_dim, num_heads * out_feats),
                                  jnp.float32) * (1.0 / np.sqrt(in_dim))
            al = jax.random.normal(k2, (num_heads * out_feats,), jnp.float32) * 0.1
            ar = jax.random.normal(k3, (num_heads * out_feats,), jnp.float32) * 0.1
            b = jax.random.normal(k4, (num_heads * out_feats,), jnp.float32) * 0.1
            layers.append((w, al, ar, b, out_feats))
            in_dim = num_heads * out_feats
        all_params.append(layers)
    return all_params


# ----------------------------------------------------------------------------
# Pure-JAX reference (mirrors the bf16 casts used on the MXU / writeback path)
# ----------------------------------------------------------------------------
def _ref_gat_conv_relu(x, adj, w, al, ar, b, H, D):
    N = x.shape[0]
    xb = x.astype(jnp.bfloat16).astype(jnp.float32)
    wb = w.astype(jnp.bfloat16).astype(jnp.float32)
    h = xb @ wb
    h3 = h.astype(jnp.bfloat16).astype(jnp.float32).reshape(N, H, D)
    alb = al.reshape(H, D).astype(jnp.bfloat16).astype(jnp.float32)
    arb = ar.reshape(H, D).astype(jnp.bfloat16).astype(jnp.float32)
    el = jnp.einsum("nhd,hd->nh", h3, alb)
    er = jnp.einsum("nhd,hd->nh", h3, arb)
    s = el[None, :, :] + er[:, None, :]                   # (dst, src, H)
    s = jnp.where(s > 0, s, 0.2 * s)
    mask = (adj.T > 0)[:, :, None]
    s = jnp.where(mask, s, _NEG)
    p = jnp.where(mask, jnp.exp(s - jnp.max(s, axis=1, keepdims=True)), 0.0)
    den = jnp.sum(p, axis=1, keepdims=True)
    alpha = p / jnp.where(den > 0, den, 1.0)
    alpha = alpha.astype(jnp.bfloat16).astype(jnp.float32)
    out = jnp.einsum("jih,ihd->jhd", alpha, h3) + b.reshape(1, H, D)
    out = jnp.maximum(out, 0.0)
    # kernel stores the layer output in bf16
    return out.astype(jnp.bfloat16).astype(jnp.float32)


def _ref_heter_gat(sub_graphs, features, all_params, num_heads):
    outs = []
    for i, adj in enumerate(sub_graphs):
        h = features
        for (w, al, ar, b, out_feats) in all_params[i]:
            h = _ref_gat_conv_relu(h.reshape(h.shape[0], -1), adj, w, al, ar,
                                   b, num_heads, out_feats)
        outs.append(jnp.mean(h, axis=1))
    return jnp.sum(jnp.stack(outs, axis=0), axis=0)


# ----------------------------------------------------------------------------
if __name__ == "__main__":
    key = jax.random.PRNGKey(0)

    # small shapes: 16 nodes, layer_dim [32, 32, 16], 4 heads, 3 edge types
    N = 16
    layer_dim = [32, 32, 16]
    num_heads = 4
    edge_types = ["CC", "CN", "NN"]

    key, kf, kg, kp = jax.random.split(key, 4)
    features = jax.random.normal(kf, (N, layer_dim[0]), jnp.float32)

    # dense "sub_graph" adjacency matrices (A[i, j] > 0 => edge i -> j)
    sub_graphs = []
    for _ in range(len(edge_types)):
        kg, ka = jax.random.split(kg)
        a = (jax.random.uniform(ka, (N, N)) > 0.6).astype(jnp.float32)
        sub_graphs.append(a)

    all_params = init_params(kp, layer_dim, num_heads, len(edge_types))

    out = heter_gat(sub_graphs, features, all_params, num_heads,
                    aggregation="sum")
    out = jax.block_until_ready(out)

    ref = jax.block_until_ready(
        _ref_heter_gat(sub_graphs, features, all_params, num_heads))

    assert out.shape == (N, layer_dim[-1]), out.shape
    np.testing.assert_allclose(np.asarray(out), np.asarray(ref),
                               rtol=2e-2, atol=2e-2)
    print("KERNEL_OK")
</pallas_src>

<mosaic_0001>
module attributes {stable_mosaic.version = 11 : i64} {
  func.func @_proj_kernel(%arg0: i32, %arg1: memref<16x32xbf16, #tpu.memory_space<vmem>>, %arg2: memref<32x128xbf16, #tpu.memory_space<vmem>>, %arg3: memref<4x128xbf16, #tpu.memory_space<vmem>>, %arg4: memref<128x4xbf16, #tpu.memory_space<vmem>>, %arg5: memref<16x128xbf16, #tpu.memory_space<vmem>>, %arg6: memref<4x16xf32, #tpu.memory_space<vmem>>, %arg7: memref<16x4xf32, #tpu.memory_space<vmem>>) attributes {dimension_semantics = [#tpu.dimension_semantics<parallel>], iteration_bounds = array<i64: 1>, scalar_prefetch = 0 : i64, scratch_operands = 0 : i64, tpu.core_type = #tpu.core_type<tc>, window_params = [{transform_indices = @transform_0, window_bounds = array<i64: 16, 32>}, {pipeline_mode = #tpu.pipeline_mode<synchronous>, transform_indices = @transform_1, window_bounds = array<i64: 32, 128>}, {pipeline_mode = #tpu.pipeline_mode<synchronous>, transform_indices = @transform_2, window_bounds = array<i64: 4, 128>}, {pipeline_mode = #tpu.pipeline_mode<synchronous>, transform_indices = @transform_3, window_bounds = array<i64: 128, 4>}, {transform_indices = @transform_4, window_bounds = array<i64: 16, 128>}, {transform_indices = @transform_5, window_bounds = array<i64: 4, 16>}, {transform_indices = @transform_6, window_bounds = array<i64: 16, 4>}]} {
    %c0 = arith.constant 0 : index
    %c0_0 = arith.constant 0 : index
    %0 = vector.load %arg1[%c0, %c0_0] : memref<16x32xbf16, #tpu.memory_space<vmem>>, vector<16x32xbf16>
    %c0_1 = arith.constant 0 : index
    %c0_2 = arith.constant 0 : index
    %1 = vector.load %arg2[%c0_1, %c0_2] : memref<32x128xbf16, #tpu.memory_space<vmem>>, vector<32x128xbf16>
    %cst = arith.constant dense<0.000000e+00> : vector<16x128xf32>
    %2 = tpu.matmul %0, %1, %cst {dimension_numbers = #tpu.dot_dimension_numbers<[1], [0], [0], [1], [0, 0, 1, 1], [], []>} : vector<16x32xbf16>, vector<32x128xbf16>, vector<16x128xf32> -> vector<16x128xf32>
    %3 = arith.truncf %2 : vector<16x128xf32> to vector<16x128xbf16>
    %c0_3 = arith.constant 0 : index
    %c0_4 = arith.constant 0 : index
    %4 = vector.load %arg5[%c0_3, %c0_4] : memref<16x128xbf16, #tpu.memory_space<vmem>>, vector<16x128xbf16>
    tpu.vector_store %arg5[%c0_3, %c0_4], %3 {strides = array<i32>} : memref<16x128xbf16, #tpu.memory_space<vmem>>, vector<16x128xbf16>,
    %c0_5 = arith.constant 0 : index
    %c0_6 = arith.constant 0 : index
    %5 = vector.load %arg3[%c0_5, %c0_6] : memref<4x128xbf16, #tpu.memory_space<vmem>>, vector<4x128xbf16>
    "tpu.trace_start"() <{level = 10 : i32, message = "hk,nk->hn"}> : () -> ()
    %cst_7 = arith.constant dense<0.000000e+00> : vector<4x16xf32>
    %6 = tpu.matmul %5, %3, %cst_7 {dimension_numbers = #tpu.dot_dimension_numbers<[1], [1], [0], [0], [0, 0, 1, 0], [], []>} : vector<4x128xbf16>, vector<16x128xbf16>, vector<4x16xf32> -> vector<4x16xf32>
    "tpu.trace_stop"() : () -> ()
    %c0_8 = arith.constant 0 : index
    %c0_9 = arith.constant 0 : index
    %7 = vector.load %arg6[%c0_8, %c0_9] : memref<4x16xf32, #tpu.memory_space<vmem>>, vector<4x16xf32>
    tpu.vector_store %arg6[%c0_8, %c0_9], %6 {strides = array<i32>} : memref<4x16xf32, #tpu.memory_space<vmem>>, vector<4x16xf32>,
    %c0_10 = arith.constant 0 : index
    %c0_11 = arith.constant 0 : index
    %8 = vector.load %arg4[%c0_10, %c0_11] : memref<128x4xbf16, #tpu.memory_space<vmem>>, vector<128x4xbf16>
    %cst_12 = arith.constant dense<0.000000e+00> : vector<16x4xf32>
    %9 = tpu.matmul %3, %8, %cst_12 {dimension_numbers = #tpu.dot_dimension_numbers<[1], [0], [0], [1], [0, 0, 1, 1], [], []>} : vector<16x128xbf16>, vector<128x4xbf16>, vector<16x4xf32> -> vector<16x4xf32>
    %c0_13 = arith.constant 0 : index
    %c0_14 = arith.constant 0 : index
    %10 = vector.load %arg7[%c0_13, %c0_14] : memref<16x4xf32, #tpu.memory_space<vmem>>, vector<16x4xf32>
    tpu.vector_store %arg7[%c0_13, %c0_14], %9 {strides = array<i32>} : memref<16x4xf32, #tpu.memory_space<vmem>>, vector<16x4xf32>,
    return
  }
  func.func @transform_0(%arg0: i32) -> (i32, i32) {
    %c0_i32 = arith.constant 0 : i32
    %c0_i32_0 = arith.constant 0 : i32
    return %arg0, %c0_i32 : i32, i32
  }
  func.func @transform_1(%arg0: i32) -> (i32, i32) {
    %c0_i32 = arith.constant 0 : i32
    %c0_i32_0 = arith.constant 0 : i32
    %c0_i32_1 = arith.constant 0 : i32
    return %c0_i32, %c0_i32_0 : i32, i32
  }
  func.func @transform_2(%arg0: i32) -> (i32, i32) {
    %c0_i32 = arith.constant 0 : i32
    %c0_i32_0 = arith.constant 0 : i32
    %c0_i32_1 = arith.constant 0 : i32
    return %c0_i32, %c0_i32_0 : i32, i32
  }
  func.func @transform_3(%arg0: i32) -> (i32, i32) {
    %c0_i32 = arith.constant 0 : i32
    %c0_i32_0 = arith.constant 0 : i32
    %c0_i32_1 = arith.constant 0 : i32
    return %c0_i32, %c0_i32_0 : i32, i32
  }
  func.func @transform_4(%arg0: i32) -> (i32, i32) {
    %c0_i32 = arith.constant 0 : i32
    %c0_i32_0 = arith.constant 0 : i32
    return %arg0, %c0_i32 : i32, i32
  }
  func.func @transform_5(%arg0: i32) -> (i32, i32) {
    %c0_i32 = arith.constant 0 : i32
    %c0_i32_0 = arith.constant 0 : i32
    return %c0_i32, %arg0 : i32, i32
  }
  func.func @transform_6(%arg0: i32) -> (i32, i32) {
    %c0_i32 = arith.constant 0 : i32
    %c0_i32_0 = arith.constant 0 : i32
    return %arg0, %c0_i32 : i32, i32
  }
}

</mosaic_0001>

<bundles_post_ra>
// kernel: tpu_custom_call.1
= control target key start
LH: loop header
LB: loop body
LE: loop exit
PB: predicated region body
PF: predicated region fallthrough
CT: control target
= control target key end

     0   :  { %12 = vsyncpa [#allocation3], 0  ;;  %s413_s0 = inlined_call_operand.vmem [shape: bf16[16,32], index: 0, kind: input, shape index: {}]   ;;  %s414_s1 = inlined_call_operand.vmem [shape: bf16[32,128], index: 1, kind: input, shape index: {}]   ;;  %s415_s2 = inlined_call_operand.vmem [shape: bf16[4,128], index: 2, kind: input, shape index: {}]   ;;  %s416_s3 = inlined_call_operand.vmem [shape: bf16[128,4], index: 3, kind: input, shape index: {}]   ;;  %s417_s4 = inlined_call_operand.hbm [shape: bf16[16,128], index: 4, kind: output, shape index: {0}]   ;;  %s418_s5 = inlined_call_operand.hbm [shape: f32[4,16], index: 5, kind: output, shape index: {1}]   ;;  %s419_s6 = inlined_call_operand.vmem [shape: f32[16,4], index: 6, kind: output, shape index: {2}]  }
   0x1   :  { %v256_v0 = vld [vmem:[%s414_s1 + $0x8] sm:$0xff]  ;;  %v264_v1 = vld [vmem:[%s416_s3 + $0x38] sm:$0xff]  ;;  %v255_v2 = vld [vmem:[%s414_s1] sm:$0xff] }
   0x2   :  { %56 = vmatpush.bf16.msra.mxu0 %v256_v0 }
   0x3   :  { %13 = vsyncpa [#allocation5], 0  ;;  %154 = vmatpush.bf16.msra.mxu2 %v264_v1  ;;  %v263_v3 = vld [vmem:[%s416_s3 + $0x30] sm:$0xff]  ;;  %v254_v4 = vld [vmem:[%s413_s0] sm:$0xff]  ;;  %vm46_vm0 = vcmask 261120   ;;  %s326_s19 = smov [#allocation2]  }
   0x4   :  { %v262_v5 = vld [vmem:[%s416_s3 + $0x28] sm:$0xff]  ;;  %v261_v6 = vld [vmem:[%s416_s3 + $0x20] sm:$0xff]  ;;  %v260_v7 = vld [vmem:[%s416_s3 + $0x18] sm:$0xff]  ;;  %s175_s20 = sshll.u32 %s326_s19, 4  ;;  %s177_s22 = sshll.u32 %s417_s4, 4  ;;  %vm168_vm1 = vcmask 31744   ;;  %s176_s20 = int_to_ptr.vmem [resolvable:$true] %s175_s20  ;;  %s178_s22 = int_to_ptr.hbm [resolvable:$true] %s177_s22 }
   0x5   :  { %v259_v8 = vld [vmem:[%s416_s3 + $0x10] sm:$0xff]  ;;  %v258_v9 = vld [vmem:[%s416_s3 + $0x8] sm:$0xff]  ;;  %v257_v10 = vld [vmem:[%s416_s3] sm:$0xff]  ;;  %s327_s23 = smov 64   ;;  %s328_s24 = smov 4   ;;  %vm88_vm2 = vcmask 125952  }
   0x6   :  { %57 = vmatpush.bf16.msra.mxu0 %v255_v2  ;;  %v68_v19 = vld [vmem:[%s415_s2] sm:$0x3]  ;;  %s329_s25 = smov [#allocation4]   ;;  %s191_s29 = sshll.u32 %s418_s5, 4  ;;  %s192_s29 = int_to_ptr.hbm [resolvable:$true] %s191_s29 }
   0x7   :  { %155 = vmatpush.bf16.msra.mxu2 %v263_v3  ;;  %s189_s26 = sshll.u32 %s329_s25, 4  ;;  %s190_s26 = int_to_ptr.vmem [resolvable:$true] %s189_s26 }
   0x9   :  { %221 = vmatmul.msk.bf16.vlgmr.msra.gmra.mxu0 %vm46_vm0, %v254_v4 }
   0xb   :  { %156 = vmatpush.bf16.msra.mxu2 %v262_v5 }
   0xf   :  { %157 = vmatpush.bf16.msra.mxu2 %v261_v6 }
  0x13   :  { %158 = vmatpush.bf16.msra.mxu2 %v260_v7 }
  0x17   :  { %159 = vmatpush.bf16.msra.mxu2 %v259_v8 }
  0x1b   :  { %160 = vmatpush.bf16.msra.mxu2 %v258_v9 }
  0x1f   :  { %161 = vmatpush.bf16.msra.mxu2 %v257_v10 }
  0x86   :  { %v59_v11 = vpop.f32.mrf.mxu0 }
  0x87   :  { %v64_v12 = vpack.c.bf16 %v59_v11, %v59_v11 }
  0x89   :  { %v71_v16 = vunpack.c.l.b16 %v64_v12 }
  0x8e   :  { %v61_v13 = vpop.f32.mrf.mxu0 }
  0x8f   :  { %v65_v14 = vpack.c.bf16 %v61_v13, %v61_v13  ;;  %v268_v15 = vpack.c.bf16 %v61_v13, %v59_v11 }
  0x91   :  { %269 = vst [vmem:[#allocation2] sm:$0xff] %v268_v15   ;;  %v72_v17 = vunpack.c.l.b16 %v65_v14 }
  0x92   :  { %183 = dma.vmem_to_hbm [thread:$0]  %s176_s20, 128, %s178_s22, [#allocation3], %s327_s23, %s327_s23, %s328_s24  }
  0x93   :  { %v73_v18 = vpack.c.b16 %v72_v17, %v71_v16 }
  0x95   :  { %82 = vmatpush.bf16.xpose.msra.mxu1 %v73_v18  ;;  %162 = vmatmul.bf16.vlgmr.msra.gmra.mxu2 %v73_v18 }
  0x9c   :  { %83 = vmatmul.bf16.vlgmr.msra.gmra.mxu1 %v68_v19 }
 0x118   :  { %v163_v20 = vpop.f32.mrf.mxu2 }
 0x119   :  { %169 = vst.msk [vmem:[%s419_s6] sm:$0xff] %vm168_vm1, %v163_v20  ;;  %v84_v21 = vpop.f32.mrf.mxu1 }
 0x11a   :  { %89 = vst.msk [vmem:[#allocation4] sm:$0xf] %vm88_vm2, %v84_v21 }
 0x11b   :  { %194 = dma.vmem_to_hbm [thread:$0]  %s190_s26, 64, %s192_s29, [#allocation5]  }
 0x120   :  { %v165_v22 = vpop.f32.mrf.mxu2 }
 0x121   :  { %170 = vst.msk [vmem:[%s419_s6 + $0x8] sm:$0xff] %vm168_vm1, %v165_v22  ;;  %v86_v23 = vpop.f32.mrf.mxu1 }
 0x122   :  { %322 = dma.done.wait [#allocation3], 128  }
 0x123   :  { %323 = vsyncadd [#allocation3], 4294967168 }
 0x124   :  { %324 = dma.done.wait [#allocation5], 64  }
 0x125   :  { %325 = vsyncadd [#allocation5], 4294967232 }
 0x126   :  { %207 = vsyncpa [#allocation3], 1 }
 0x127   :  { %208 = vsyncpa [#allocation5], 1 }

</bundles_post_ra>
